<compile_context>
chip_gen: v5e
topology: v5e:2x2
jax: 0.10.0
libtpu: 0.0.40
codegen_flags: <defaults>
</compile_context>

<pallas_src>
import functools

import jax
import jax.numpy as jnp
from jax import lax
from jax.experimental import pallas as pl
from jax.experimental.pallas import tpu as pltpu


def _round_up(x, m):
    return (x + m - 1) // m * m


def _cdiv(a, b):
    return (a + b - 1) // b


def _vmem_budget_bytes():
    # Generation-aware VMEM request.  Leave headroom for compiler temporaries and
    # the default double-buffers on the resident weight/param specs.  Falls back
    # to the v7x-safe 64 MiB physical ceiling if the query is unavailable.
    try:
        cap = int(pltpu.get_tpu_info().vmem_capacity_bytes)
    except Exception:
        cap = 64 << 20
    return min(cap * 3 // 4, 96 << 20)   # ~48 MiB on v7x, ~96 MiB on v5e/v6e


def _pick_tile_l(l_out, sc, h, budget):
    # Per-output-row VMEM cost with (sublane, lane) padding: double-buffered
    # input/output tiles plus a generous allowance for f32 LayerNorm temporaries.
    lane = 128
    in_row = _round_up(sc, lane) * 2                       # bf16 input chunk row
    out_row = _round_up(h, lane) * 2                       # bf16 output row
    tmp_row = 4 * _round_up(h, lane) * 4 + 2 * _round_up(sc, lane) * 2
    per_row = 2 * in_row + 2 * out_row + tmp_row
    cap = max(32, (budget // 2) // per_row)
    tile_max = max(32, min(8192, cap // 32 * 32))

    tile_l = min(_round_up(l_out, 32), tile_max)
    n_tiles = _cdiv(l_out, tile_l)
    tile_l = _round_up(_cdiv(l_out, n_tiles), 32)          # minimize padding
    n_tiles = _cdiv(l_out, tile_l)
    return tile_l, n_tiles


def _vmem_limit_bytes(tile_l, sc, h, n_halo, nchunk, budget):
    lane = 128
    in_tile = _round_up(tile_l, 16) * _round_up(sc, lane) * 2
    out_tile = _round_up(tile_l, 16) * _round_up(h, lane) * 2
    halo_tile = _round_up(n_halo, 16) * _round_up(sc, lane) * 2
    w_bytes = nchunk * _round_up(sc, 16) * _round_up(h, lane) * 2
    p_bytes = 8 * _round_up(h, lane) * 4
    tmp = tile_l * (4 * _round_up(h, lane) * 4 + 2 * _round_up(sc, lane) * 2)
    need = 2 * (in_tile + out_tile + halo_tile + w_bytes + p_bytes) + tmp + (4 << 20)
    return int(min(max(need, 16 << 20), budget))


# ---------------------------------------------------------------------------
# Pallas kernel: fused Conv1d (via nchunk shifted matmuls) + bias + LayerNorm.
# ---------------------------------------------------------------------------
def _conv_ln_kernel(x_ref, halo_ref, w_ref, p_ref, o_ref, *, eps, nchunk, tile_l):
    # x_ref:    (1, tile_l, SC)     bf16  stride-chunked input rows for this tile
    # halo_ref: (1, 1, n_halo, SC)  bf16  first chunk rows of the next tile
    # w_ref:    (nchunk, SC, H)     bf16  per-chunk-offset conv weight slabs
    # p_ref:    (3, H)              f32   rows: conv bias, LN gamma, LN beta
    # o_ref:    (1, tile_l, H)      bf16
    xm = x_ref[0]
    if nchunk > 1:
        xw = jnp.concatenate([xm, halo_ref[0, 0]], axis=0)   # (tile_l + n_halo, SC)
    else:
        xw = xm

    # Conv1d as nchunk row-shifted matmuls accumulated in f32; the overlapping
    # windows are rebuilt in VMEM — im2col is never materialized in HBM.
    y = jnp.dot(xw[0:tile_l], w_ref[0], preferred_element_type=jnp.float32)
    for j in range(1, nchunk):
        y = y + jnp.dot(xw[j:j + tile_l], w_ref[j], preferred_element_type=jnp.float32)
    y = y + p_ref[0:1, :]                                     # conv bias

    # LayerNorm over the hidden axis: centered two-pass statistics in f32
    # (avoids E[y^2]-E[y]^2 catastrophic cancellation), rsqrt on the EUP.
    inv_h = 1.0 / y.shape[-1]
    mean = jnp.sum(y, axis=-1, keepdims=True) * inv_h
    yc = y - mean
    var = jnp.sum(yc * yc, axis=-1, keepdims=True) * inv_h
    inv = lax.rsqrt(jnp.maximum(var, 0.0) + eps)

    # TODO(synk): for H < 128 stages repack the (tile_l, H) result into a
    # lane-dense (tile_l*H/128, 128) slab before the store (full-width vst
    # instead of vst.msk) once the minor-dim merge reshape is validated under
    # Mosaic on all three chip generations.
    o_ref[0] = (yc * inv * p_ref[1:2, :] + p_ref[2:3, :]).astype(o_ref.dtype)


# ---------------------------------------------------------------------------
# Module-equivalent wrapper
# ---------------------------------------------------------------------------
class SegformerOverlapPatchEmbeddingsPallas:
    def __init__(self, patch_size, stride, num_channels, hidden_size, key,
                 out_dtype=jnp.bfloat16):
        self.patch_size = patch_size
        self.stride = stride
        self.num_channels = num_channels
        self.hidden_size = hidden_size
        self.padding = patch_size // 2
        self.out_dtype = out_dtype
        self.eps = 1e-5

        K, S, C, H = patch_size, stride, num_channels, hidden_size
        self.nchunk = (K - 1) // S + 1                 # chunks touched per window
        self.n_halo = _round_up(max(self.nchunk - 1, 1), 8)
        self.sc = S * C

        k1, k2 = jax.random.split(key)
        # Deterministic synthetic parameters (shapes match nn.Conv1d / nn.LayerNorm).
        fan_in = C * K
        bound = float(fan_in) ** -0.5
        self.conv_w = jax.random.uniform(
            k1, (H, C, K), minval=-bound, maxval=bound, dtype=jnp.float32)
        self.conv_b = jax.random.uniform(
            k2, (H,), minval=-bound, maxval=bound, dtype=jnp.float32)
        self.ln_w = jnp.ones((H,), jnp.float32)        # PyTorch default init
        self.ln_b = jnp.zeros((H,), jnp.float32)

        # --- kernel-side parameters, precomputed once ---------------------------
        # Conv weight (H, C, K) -> per-chunk-offset slabs (nchunk, S*C, H), where
        # slab j row (s*C + c) holds tap k = j*S + s (zero for k >= K).
        w_t = jnp.transpose(self.conv_w, (2, 1, 0))            # (K, C, H)
        w_t = jnp.pad(w_t, ((0, self.nchunk * S - K), (0, 0), (0, 0)))
        self.w_mat = w_t.reshape(self.nchunk, S * C, H).astype(jnp.bfloat16)
        # Conv bias / LN gamma / LN beta packed into a single resident block.
        self.params = jnp.stack([self.conv_b, self.ln_w, self.ln_b], axis=0)  # (3, H) f32

    def __call__(self, pixel_values):
        # pixel_values: (B, L, C) — matches PyTorch forward (transpose happens inside)
        B, L, C = pixel_values.shape
        assert C == self.num_channels
        K, S, P, H = self.patch_size, self.stride, self.padding, self.hidden_size
        sc, nchunk, n_halo = self.sc, self.nchunk, self.n_halo
        length = L                                   # PyTorch returns shape[1] pre-transpose

        L_out = (L + 2 * P - K) // S + 1
        budget = _vmem_budget_bytes()
        tile_l, n_tiles = _pick_tile_l(L_out, sc, H, budget)

        # One cheap contiguous pad + bf16 cast + chunk reshape of the input.  The
        # old K/S-inflated im2col gather in HBM is gone.
        # TODO(synk): fold the edge zero-padding into the kernel (masked first/last
        # windows) to remove this remaining 1x input copy as well.
        n_chunks = max(n_tiles * tile_l + n_halo, _cdiv(L + 2 * P, S))
        pad_right = n_chunks * S - L - P
        x = jnp.pad(pixel_values.astype(jnp.bfloat16), ((0, 0), (P, pad_right), (0, 0)))
        xr = x.reshape(B, n_chunks, sc)              # (B, n_chunks, S*C)

        # Tiny per-tile halo: the chunk rows shared with the next tile (~n_halo/tile_l
        # extra HBM, i.e. <1% for production tile sizes).
        starts = jnp.arange(1, n_tiles + 1) * tile_l
        halo_idx = starts[:, None] + jnp.arange(n_halo)[None, :]
        halo = xr[:, halo_idx, :]                    # (B, n_tiles, n_halo, S*C)

        vmem_limit = _vmem_limit_bytes(tile_l, sc, H, n_halo, nchunk, budget)
        kernel = functools.partial(_conv_ln_kernel, eps=self.eps,
                                   nchunk=nchunk, tile_l=tile_l)

        out = pl.pallas_call(
            kernel,
            out_shape=jax.ShapeDtypeStruct((B, n_tiles * tile_l, H), self.out_dtype),
            grid=(B, n_tiles),
            in_specs=[
                pl.BlockSpec((1, tile_l, sc), lambda b, j: (b, j, 0)),
                pl.BlockSpec((1, 1, n_halo, sc), lambda b, j: (b, j, 0, 0)),
                pl.BlockSpec((nchunk, sc, H), lambda b, j: (0, 0, 0)),   # resident
                pl.BlockSpec((3, H), lambda b, j: (0, 0)),               # resident
            ],
            out_specs=pl.BlockSpec((1, tile_l, H), lambda b, j: (b, j, 0)),
            compiler_params=pltpu.CompilerParams(
                dimension_semantics=("parallel", "parallel"),
                vmem_limit_bytes=vmem_limit,
            ),
        )(xr, halo, self.w_mat, self.params)

        embeddings = out[:, :L_out, :]               # drop tile padding rows
        return embeddings, length


# ---------------------------------------------------------------------------
# Pure-JAX reference (lax conv + layernorm, same bf16 operand rounding)
# ---------------------------------------------------------------------------
def _reference(pixel_values, mod):
    x = pixel_values.astype(jnp.bfloat16).astype(jnp.float32)
    w = mod.conv_w.astype(jnp.bfloat16).astype(jnp.float32)
    x = jnp.transpose(x, (0, 2, 1))                  # (B, C, L)
    y = lax.conv_general_dilated(
        x, w, window_strides=(mod.stride,),
        padding=[(mod.padding, mod.padding)],
        dimension_numbers=("NCH", "OIH", "NCH"),
        precision=lax.Precision.HIGHEST)
    y = y + mod.conv_b[None, :, None]
    y = jnp.transpose(y, (0, 2, 1))                  # (B, L_out, H)
    mean = jnp.mean(y, axis=-1, keepdims=True)
    var = jnp.mean((y - mean) ** 2, axis=-1, keepdims=True)
    yn = (y - mean) / jnp.sqrt(var + mod.eps)
    return yn * mod.ln_w + mod.ln_b


if __name__ == "__main__":
    key = jax.random.PRNGKey(0)
    k_param, k_x = jax.random.split(key)

    B, L, C, H = 2, 16, 4, 32
    patch_size, stride = 7, 4

    mod = SegformerOverlapPatchEmbeddingsPallas(patch_size, stride, C, H, k_param)
    pixel_values = jax.random.normal(k_x, (B, L, C), dtype=jnp.float32)

    embeddings, length = mod(pixel_values)
    embeddings = jax.block_until_ready(embeddings)

    ref = _reference(pixel_values, mod)
    assert embeddings.shape == ref.shape, (embeddings.shape, ref.shape)
    assert length == L
    err = float(jnp.max(jnp.abs(embeddings.astype(jnp.float32) - ref)))
    assert err < 3e-2, f"mismatch vs reference, max err {err}"

    print("KERNEL_OK")
</pallas_src>

<mosaic_0001>
module attributes {stable_mosaic.version = 11 : i64} {
  func.func @_conv_ln_kernel(%arg0: i32, %arg1: i32, %arg2: memref<1x32x16xbf16, #tpu.memory_space<vmem>>, %arg3: memref<1x1x8x16xbf16, #tpu.memory_space<vmem>>, %arg4: memref<2x16x32xbf16, #tpu.memory_space<vmem>>, %arg5: memref<3x32xf32, #tpu.memory_space<vmem>>, %arg6: memref<1x32x32xbf16, #tpu.memory_space<vmem>>) attributes {dimension_semantics = [#tpu.dimension_semantics<parallel>, #tpu.dimension_semantics<parallel>], iteration_bounds = array<i64: 2, 1>, scalar_prefetch = 0 : i64, scratch_operands = 0 : i64, tpu.core_type = #tpu.core_type<tc>, window_params = [{transform_indices = @transform_0, window_bounds = array<i64: 1, 32, 16>}, {transform_indices = @transform_1, window_bounds = array<i64: 1, 1, 8, 16>}, {pipeline_mode = #tpu.pipeline_mode<synchronous>, transform_indices = @transform_2, window_bounds = array<i64: 2, 16, 32>}, {pipeline_mode = #tpu.pipeline_mode<synchronous>, transform_indices = @transform_3, window_bounds = array<i64: 3, 32>}, {transform_indices = @transform_4, window_bounds = array<i64: 1, 32, 32>}]} {
    %c0 = arith.constant 0 : index
    %c0_0 = arith.constant 0 : index
    %c0_1 = arith.constant 0 : index
    %0 = vector.load %arg2[%c0, %c0_0, %c0_1] : memref<1x32x16xbf16, #tpu.memory_space<vmem>>, vector<1x32x16xbf16>
    %1 = vector.shape_cast %0 : vector<1x32x16xbf16> to vector<32x16xbf16>
    %c0_2 = arith.constant 0 : index
    %c0_3 = arith.constant 0 : index
    %c0_4 = arith.constant 0 : index
    %c0_5 = arith.constant 0 : index
    %2 = vector.load %arg3[%c0_2, %c0_3, %c0_4, %c0_5] : memref<1x1x8x16xbf16, #tpu.memory_space<vmem>>, vector<1x1x8x16xbf16>
    %3 = vector.shape_cast %2 : vector<1x1x8x16xbf16> to vector<8x16xbf16>
    %4 = tpu.concatenate %1, %3 in 0 : vector<32x16xbf16>, vector<8x16xbf16> -> vector<40x16xbf16>
    %5 = vector.extract_strided_slice %4 {offsets = [0, 0], sizes = [32, 16], strides = [1, 1]} : vector<40x16xbf16> to vector<32x16xbf16>
    %c0_6 = arith.constant 0 : index
    %c0_7 = arith.constant 0 : index
    %c0_8 = arith.constant 0 : index
    %6 = vector.load %arg4[%c0_6, %c0_7, %c0_8] : memref<2x16x32xbf16, #tpu.memory_space<vmem>>, vector<1x16x32xbf16>
    %7 = vector.shape_cast %6 : vector<1x16x32xbf16> to vector<16x32xbf16>
    %cst = arith.constant dense<0.000000e+00> : vector<32x32xf32>
    %8 = tpu.matmul %5, %7, %cst {dimension_numbers = #tpu.dot_dimension_numbers<[1], [0], [0], [1], [0, 0, 1, 1], [], []>} : vector<32x16xbf16>, vector<16x32xbf16>, vector<32x32xf32> -> vector<32x32xf32>
    %9 = vector.extract_strided_slice %4 {offsets = [1, 0], sizes = [32, 16], strides = [1, 1]} : vector<40x16xbf16> to vector<32x16xbf16>
    %c1 = arith.constant 1 : index
    %c0_9 = arith.constant 0 : index
    %c0_10 = arith.constant 0 : index
    %10 = vector.load %arg4[%c1, %c0_9, %c0_10] : memref<2x16x32xbf16, #tpu.memory_space<vmem>>, vector<1x16x32xbf16>
    %11 = vector.shape_cast %10 : vector<1x16x32xbf16> to vector<16x32xbf16>
    %cst_11 = arith.constant dense<0.000000e+00> : vector<32x32xf32>
    %12 = tpu.matmul %9, %11, %cst_11 {dimension_numbers = #tpu.dot_dimension_numbers<[1], [0], [0], [1], [0, 0, 1, 1], [], []>} : vector<32x16xbf16>, vector<16x32xbf16>, vector<32x32xf32> -> vector<32x32xf32>
    %13 = arith.addf %8, %12 : vector<32x32xf32>
    %c0_12 = arith.constant 0 : index
    %c0_13 = arith.constant 0 : index
    %14 = vector.load %arg5[%c0_12, %c0_13] : memref<3x32xf32, #tpu.memory_space<vmem>>, vector<1x32xf32>
    %15 = vector.broadcast %14 : vector<1x32xf32> to vector<32x32xf32>
    %16 = arith.addf %13, %15 : vector<32x32xf32>
    %cst_14 = arith.constant dense<0.000000e+00> : vector<32xf32>
    %17 = vector.multi_reduction <add>, %16, %cst_14 [1] : vector<32x32xf32> to vector<32xf32>
    %18 = vector.shape_cast %17 : vector<32xf32> to vector<32x1xf32>
    %cst_15 = arith.constant 3.125000e-02 : f32
    %19 = vector.broadcast %cst_15 : f32 to vector<32x1xf32>
    %20 = arith.mulf %18, %19 : vector<32x1xf32>
    %21 = vector.broadcast %20 : vector<32x1xf32> to vector<32x32xf32>
    %22 = arith.subf %16, %21 : vector<32x32xf32>
    %23 = arith.mulf %22, %22 : vector<32x32xf32>
    %cst_16 = arith.constant dense<0.000000e+00> : vector<32xf32>
    %24 = vector.multi_reduction <add>, %23, %cst_16 [1] : vector<32x32xf32> to vector<32xf32>
    %25 = vector.shape_cast %24 : vector<32xf32> to vector<32x1xf32>
    %cst_17 = arith.constant 3.125000e-02 : f32
    %26 = vector.broadcast %cst_17 : f32 to vector<32x1xf32>
    %27 = arith.mulf %25, %26 : vector<32x1xf32>
    %cst_18 = arith.constant 0.000000e+00 : f32
    %28 = vector.broadcast %cst_18 : f32 to vector<32x1xf32>
    %29 = arith.maximumf %27, %28 : vector<32x1xf32>
    %cst_19 = arith.constant 9.99999974E-6 : f32
    %30 = vector.broadcast %cst_19 : f32 to vector<32x1xf32>
    %31 = arith.addf %29, %30 : vector<32x1xf32>
    %32 = math.rsqrt %31 : vector<32x1xf32>
    %33 = vector.broadcast %32 : vector<32x1xf32> to vector<32x32xf32>
    %34 = arith.mulf %22, %33 : vector<32x32xf32>
    %c1_20 = arith.constant 1 : index
    %c0_21 = arith.constant 0 : index
    %35 = vector.load %arg5[%c1_20, %c0_21] : memref<3x32xf32, #tpu.memory_space<vmem>>, vector<1x32xf32>
    %36 = vector.broadcast %35 : vector<1x32xf32> to vector<32x32xf32>
    %37 = arith.mulf %34, %36 : vector<32x32xf32>
    %c2 = arith.constant 2 : index
    %c0_22 = arith.constant 0 : index
    %38 = vector.load %arg5[%c2, %c0_22] : memref<3x32xf32, #tpu.memory_space<vmem>>, vector<1x32xf32>
    %39 = vector.broadcast %38 : vector<1x32xf32> to vector<32x32xf32>
    %40 = arith.addf %37, %39 : vector<32x32xf32>
    %41 = arith.truncf %40 : vector<32x32xf32> to vector<32x32xbf16>
    %c0_23 = arith.constant 0 : index
    %c0_24 = arith.constant 0 : index
    %c0_25 = arith.constant 0 : index
    %42 = vector.load %arg6[%c0_23, %c0_24, %c0_25] : memref<1x32x32xbf16, #tpu.memory_space<vmem>>, vector<1x32x32xbf16>
    %43 = vector.shape_cast %42 : vector<1x32x32xbf16> to vector<32x32xbf16>
    %44 = vector.shape_cast %41 : vector<32x32xbf16> to vector<1x32x32xbf16>
    tpu.vector_store %arg6[%c0_23, %c0_24, %c0_25], %44 {strides = array<i32>} : memref<1x32x32xbf16, #tpu.memory_space<vmem>>, vector<1x32x32xbf16>,
    return
  }
  func.func @transform_0(%arg0: i32, %arg1: i32) -> (i32, i32, i32) {
    %c0_i32 = arith.constant 0 : i32
    %c0_i32_0 = arith.constant 0 : i32
    return %arg0, %arg1, %c0_i32 : i32, i32, i32
  }
  func.func @transform_1(%arg0: i32, %arg1: i32) -> (i32, i32, i32, i32) {
    %c0_i32 = arith.constant 0 : i32
    %c0_i32_0 = arith.constant 0 : i32
    %c0_i32_1 = arith.constant 0 : i32
    return %arg0, %arg1, %c0_i32, %c0_i32_0 : i32, i32, i32, i32
  }
  func.func @transform_2(%arg0: i32, %arg1: i32) -> (i32, i32, i32) {
    %c0_i32 = arith.constant 0 : i32
    %c0_i32_0 = arith.constant 0 : i32
    %c0_i32_1 = arith.constant 0 : i32
    %c0_i32_2 = arith.constant 0 : i32
    return %c0_i32, %c0_i32_0, %c0_i32_1 : i32, i32, i32
  }
  func.func @transform_3(%arg0: i32, %arg1: i32) -> (i32, i32) {
    %c0_i32 = arith.constant 0 : i32
    %c0_i32_0 = arith.constant 0 : i32
    %c0_i32_1 = arith.constant 0 : i32
    return %c0_i32, %c0_i32_0 : i32, i32
  }
  func.func @transform_4(%arg0: i32, %arg1: i32) -> (i32, i32, i32) {
    %c0_i32 = arith.constant 0 : i32
    %c0_i32_0 = arith.constant 0 : i32
    return %arg0, %arg1, %c0_i32 : i32, i32, i32
  }
}

</mosaic_0001>

<bundles_post_ra>
// kernel: tpu_custom_call.1
= control target key start
LH: loop header
LB: loop body
LE: loop exit
PB: predicated region body
PF: predicated region fallthrough
CT: control target
= control target key end

     0   :  { %9 = vsyncpa [#allocation3], 0  ;;  %s978_s0 = inlined_call_operand.vmem [shape: bf16[2,40,16], index: 0, kind: input, shape index: {}]   ;;  %s979_s1 = inlined_call_operand.vmem [shape: bf16[2,1,8,16], index: 1, kind: input, shape index: {}]   ;;  %s980_s2 = inlined_call_operand.vmem [shape: bf16[2,16,32], index: 2, kind: input, shape index: {}]   ;;  %s981_s3 = inlined_call_operand.vmem [shape: f32[3,32], index: 3, kind: input, shape index: {}]   ;;  %s982_s4 = inlined_call_operand.hbm [shape: bf16[2,32,32], index: 4, kind: output, shape index: {}]  }
   0x1   :  { %11 = vsyncpa [#allocation3 + $0x1], 0  ;;  %s828_s15 = smov 0   ;;  %s830_s16 = smov 0  }
   0x2   :  { %s832_s17 = smov 0   ;;  %s834_s18 = smov 0  }
   0x3   :  { %s836_s19 = smov 0   ;;  %s838_s20 = smov 0  }
   0x4 LB: > { %s610_s21 = sadd.s32 4294967295, %s799_s20   ;;  %s611_s22 = sadd.s32 4294967294, %s799_s20   ;;  %s799_s20 = sphi %s838_s20, %s17_s20   ;;  %s795_s19 = sphi %s836_s19, %s989_s19   ;;  %s791_s18 = sphi %s834_s18, %s988_s18   ;;  %s787_s17 = sphi %s832_s17, %s987_s17   ;;  %s783_s16 = sphi %s830_s16, %s986_s16   ;;  %s779_s15 = sphi %s828_s15, %s985_s15  }
   0x5   : > { %s29_s23 = sadd.s32 1, %s795_s19  ;;  %s136_s24 = sadd.s32 1, %s787_s17 }
   0x6   : > { %p31_p0 = scmp.ge.s32.totalorder %s29_s23, 2  ;;  %p146_p1 = scmp.ne.s32.totalorder %s787_s17, %s783_s16 }
   0x7   : > { %p147_p2 = scmp.eq.s32.totalorder %s610_s21, 1  ;;  %p152_p3 = scmp.ne.s32.totalorder %s783_s16, %s779_s15 }
   0x8   : > { %s991_s23 = smov (%p31_p0, %s29_s23), 0  ;;  %p153_p5 = scmp.eq.s32.totalorder %s611_s22, 1 }
   0x9   : > { %p868_p4 = por %p147_p2, %p146_p1  ;;  %s131_s26 = ssub.s32 %s795_s19, %s991_s23 }
   0xa   : > { %p614_p6 = scmp.ge.s32.totalorder %s799_s20, 1  ;;  %p134_p7 = scmp.eq.s32.totalorder %s131_s26, 0 }
   0xb   : > { %p875_p8 = por %p153_p5, %p152_p3  ;;  %p208_p9 = scmp.lt.s32.totalorder %s799_s20, 3 }
   0xc   : > { %s881_s28 = scalar_select %p134_p7, %s787_s17, %s136_s24  }
   0xd   : > { %p209_p10 = pnand %p614_p6, %p208_p9 }
   0xe   : > { %p254_p11 = scmp.lt.s32.totalorder (!%p209_p10), %s791_s18, 1  ;;  %s246_s30 = sand.u32 (!%p209_p10), 1, %s783_s16  }
   0xf   : > { %212 = sbr.rel (%p209_p10) target bundleno = 453 (0x1c5), region = 36  ;;  %s499_s14 = scalar_lea.sflag (!%p209_p10), [#allocation3], %s246_s30 }
  0x10   : > { %s741_s29 = scalar_lea.hbm (!%p209_p10), %s982_s4, 32 }
  0x14   : > { %v647_v0 = vld [vmem:[%s980_s2] sm:$0xff]  ;;  %v648_v1 = vld [vmem:[%s980_s2 + $0x8] sm:$0xff]  ;;  %s255_s7 = scalar_select %p254_p11, %s791_s18, 1  ;;  %vm323_vm0 = vcmask 130048   ;;  %vm296_vm1 = vsmask.f32 7424 }
  0x15   : > { %651 = vmatpush.bf16.msra.mxu3 %v647_v0  ;;  %366 = vmatpush.bf16.msra.mxu1 %v647_v0  ;;  %v710_v18 = vld [vmem:[%s981_s3] ss:$0 sm:$0xff]  ;;  %vm384_vm2 = vcmask 261120   ;;  %vm493_vm9 = vcmask 257024  }
  0x16   : > { %337 = vmatpush.bf16.msra.mxu0 %v648_v1  ;;  %650 = vmatpush.bf16.msra.mxu2 %v648_v1  ;;  %s652_s8 = smul.u32 20, %s255_s7  ;;  %s617_s9 = sshll.u32 %s255_s7, 2 }
  0x17   : > { %s273_s12 = scalar_lea.vmem %s979_s1, %s617_s9  ;;  %s615_s7 = sshll.u32 %s246_s30, 4 }
  0x18   : > { %s261_s21 = scalar_lea.vmem %s978_s0, %s652_s8  ;;  %v280_v2 = vld [vmem:[%s273_s12] sm:$0xf]  ;;  %s248_s8 = scalar_lea.vmem [#allocation2], %s615_s7 }
  0x19   : > { %v646_v3 = vld [vmem:[%s261_s21 + $0x8] sm:$0xff]  ;;  %v645_v4 = vld [vmem:[%s261_s21] sm:$0xff]  ;;  %v313_v5 = vshll.u32 %v280_v2, 16  ;;  %s649_s9 = sshll.u32 %s791_s18, 4  ;;  %s513_s18 = sshll.u32 %s248_s8, 4  ;;  %s514_s18 = int_to_ptr.vmem [resolvable:$true] %s513_s18 }
  0x1a   : > { %639 = vmatmul.msk.bf16.vlgmr.msra.gmra.mxu3 %vm323_vm0, %v646_v3  ;;  %v300_v6 = vshll.u32 %v645_v4, 16  ;;  %638 = vmatmul.msk.bf16.vlgmr.msra.gmra.mxu1 %vm323_vm0, %v645_v4  ;;  %v298_v7 = vshrl.u32 %v645_v4, 16  ;;  %v305_v8 = vshll.u32 %v646_v3, 16  ;;  %v309_v9 = vshrl.u32 %v646_v3, 16  ;;  %s512_s12 = scalar_lea.hbm %s982_s4, %s649_s9 }
  0x1b   : > { %v315_v12 = vrot.slane %v313_v5, 1  ;;  %s515_s13 = sshll.u32 %s512_s12, 4  ;;  %s516_s13 = int_to_ptr.hbm [resolvable:$true] %s515_s13 }
  0x1c   : > { %v302_v10 = vrot.slane %v300_v6, 1  ;;  %v307_v11 = vrot.slane %v305_v8, 1  ;;  %s735_s21 = sshra.s32 %s516_s13, 4  ;;  %s736_s21 = int_to_ptr.hbm [resolvable:$true] %s735_s21 }
  0x1d   : > { %s737_s22 = scalar_lea.hbm %s736_s21, 16  ;;  %p742_p1 = scmp.lt.s32.totalorder %s736_s21, %s982_s4 }
  0x1e   : > { %v303_v13 = vor.u32 %v302_v10, %v298_v7  ;;  %v311_v14 = vor.u32 %v309_v9, %v307_v11  ;;  %p738_p12 = scmp.ne.s32.totalorder %s736_s21, %s737_s22  ;;  %p743_p2 = scmp.lt.s32.totalorder %s741_s29, %s737_s22 }
  0x20   : > { %v308_v15 = vsel %vm296_vm1, %v303_v13, %v307_v11  ;;  %v316_v16 = vsel %vm296_vm1, %v311_v14, %v315_v12  ;;  %p739_p13 = pnand %p738_p12, %p868_p4  ;;  %p744_p3 = por %p743_p2, %p742_p1 }
  0x21   : > { %632 = vmatmul.msk.bf16.vlgmr.msra.gmra.mxu0 %vm323_vm0, %v308_v15  ;;  %633 = vmatmul.msk.bf16.vlgmr.msra.gmra.mxu2 %vm323_vm0, %v316_v16 }
  0x22   : > { %p740_p0 = pneg %p739_p13 }
  0x24   : > { %p745_p5 = pnand %p744_p3, %p740_p0 }
  0x97   : > { %v368_v17 = vpop.f32.mrf.mxu1 }
  0x9d   : > { %v373_v22 = vpop.f32.mrf.mxu3 }
  0x9e   : > { %v339_v19 = vpop.f32.mrf.mxu0 }
  0x9f   : > { %v369_v20 = vadd.f32 %v368_v17, %v339_v19  ;;  %v370_v26 = vpop.f32.mrf.mxu1 }
  0xa1   : > { %v380_v21 = vadd.f32 %v710_v18, %v369_v20 }
  0xa3   : > { %v385_v23 = vsel %vm384_vm2, %v380_v21, 0.0 }
  0xa4   : > { %v344_v24 = vpop.f32.mrf.mxu2  ;;  %386 = vadd.xlane.f32.xlu0 %v385_v23 }
  0xa5   : > { %v374_v25 = vadd.f32 %v373_v22, %v344_v24  ;;  %v375_v33 = vpop.f32.mrf.mxu3 }
  0xa6   : > { %v341_v27 = vpop.f32.mrf.mxu0 }
  0xa7   : > { %v371_v28 = vadd.f32 %v370_v26, %v341_v27  ;;  %v382_v29 = vadd.f32 %v710_v18, %v374_v25  ;;  %v712_v25 = vld [vmem:[%s981_s3 + $0x2] ss:$0 sm:$0xff] }
  0xa9   : > { %v391_v30 = vsel %vm384_vm2, %v382_v29, 0.0  ;;  %v381_v31 = vadd.f32 %v710_v18, %v371_v28 }
  0xaa   : > { %392 = vadd.xlane.f32.xlu1 %v391_v30 }
  0xab   : > { %v388_v32 = vsel %vm384_vm2, %v381_v31, 0.0 }
  0xac   : > { %v346_v34 = vpop.f32.mrf.mxu2  ;;  %389 = vadd.xlane.f32.xlu0 %v388_v32 }
  0xad   : > { %v376_v35 = vadd.f32 %v375_v33, %v346_v34 }
  0xaf   : > { %v383_v36 = vadd.f32 %v710_v18, %v376_v35 }
  0xb1   : > { %v394_v37 = vsel %vm384_vm2, %v383_v36, 0.0 }
  0xb2   : > { %395 = vadd.xlane.f32.xlu1 %v394_v37 }
 0x117   : > { %v387_v38 = vpop.xlane.xlu0 %386 }
 0x118   : > { %v397_v39 = vmul.f32 0.03125, %v387_v38 }
 0x11a   : > { %v401_v40 = vsub.f32 %v380_v21, %v397_v39  ;;  %v711_v21 = vld [vmem:[%s981_s3 + $0x1] ss:$0 sm:$0xff] }
 0x11c   : > { %v405_v41 = vmul.f32 %v401_v40, %v401_v40 }
 0x11d   : > { %v393_v42 = vpop.xlane.xlu1 %392 }
 0x11e   : > { %v399_v43 = vmul.f32 0.03125, %v393_v42  ;;  %v409_v44 = vsel %vm384_vm2, %v405_v41, 0.0 }
 0x11f   : > { %410 = vadd.xlane.f32.xlu2 %v409_v44  ;;  %v390_v45 = vpop.xlane.xlu0 %389 }
 0x120   : > { %v909_v46 = vsub.f32 %v382_v29, %v399_v43  ;;  %v398_v47 = vmul.f32 0.03125, %v390_v45 }
 0x122   : > { %v911_v48 = vsub.f32 %v381_v31, %v398_v47  ;;  %v407_v49 = vmul.f32 %v909_v46, %v909_v46 }
 0x124   : > { %v415_v50 = vsel %vm384_vm2, %v407_v49, 0.0  ;;  %v406_v51 = vmul.f32 %v911_v48, %v911_v48 }
 0x125   : > { %v396_v52 = vpop.xlane.xlu1 %395  ;;  %416 = vadd.xlane.f32.xlu0 %v415_v50 }
 0x126   : > { %v400_v53 = vmul.f32 0.03125, %v396_v52  ;;  %v412_v54 = vsel %vm384_vm2, %v406_v51, 0.0 }
 0x127   : > { %413 = vadd.xlane.f32.xlu2 %v412_v54 }
 0x128   : > { %v919_v55 = vsub.f32 %v383_v36, %v400_v53 }
 0x12a   : > { %v408_v56 = vmul.f32 %v919_v55, %v919_v55 }
 0x12c   : > { %v418_v57 = vsel %vm384_vm2, %v408_v56, 0.0 }
 0x12d   : > { %419 = vadd.xlane.f32.xlu1 %v418_v57 }
 0x192   : > { %v411_v58 = vpop.xlane.xlu2 %410 }
 0x193   : > { %v421_v59 = vmul.f32 0.03125, %v411_v58 }
 0x195   : > { %v425_v60 = vmax.f32 %v421_v59, 0.0 }
 0x197   : > { %v429_v61 = vadd.f32 1e-05, %v425_v60 }
 0x198   : > { %v417_v62 = vpop.xlane.xlu0 %416 }
 0x199   : > { %713 = vrsqrt.f32 %v429_v61  ;;  %v423_v63 = vmul.f32 0.03125, %v417_v62  ;;  %vm439_vm4 = vweird.f32 %v429_v61 }
 0x19a   : > { %v414_v0 = vpop.xlane.xlu2 %413 }
 0x19b   : > { %v427_v1 = vmax.f32 %v423_v63, 0.0  ;;  %v422_v2 = vmul.f32 0.03125, %v414_v0 }
 0x19d   : > { %v431_v3 = vadd.f32 1e-05, %v427_v1  ;;  %v426_v4 = vmax.f32 %v422_v2, 0.0 }
 0x19f   : > { %v714_v5 = vpop.eup %713  ;;  %715 = vrsqrt.f32 %v431_v3  ;;  %v430_v6 = vadd.f32 1e-05, %v426_v4  ;;  %vm459_vm7 = vweird.f32 %v431_v3 }
 0x1a0   : > { %v434_v7 = vmul.f32 %v714_v5, %v429_v61  ;;  %v420_v8 = vpop.xlane.xlu1 %419  ;;  %vm440_vm3 = vweird.f32 %v714_v5 }
 0x1a1   : > { %717 = vrsqrt.f32 %v430_v6  ;;  %v424_v9 = vmul.f32 0.03125, %v420_v8  ;;  %vm441_vm5 = vmor %vm439_vm4, %vm440_vm3  ;;  %vm449_vm11 = vweird.f32 %v430_v6 }
 0x1a2   : > { %v435_v10 = vmul.f32 %v714_v5, %v434_v7 }
 0x1a3   : > { %v428_v11 = vmax.f32 %v424_v9, 0.0 }
 0x1a4   : > { %v436_v12 = vmul.f32 0.5, %v435_v10 }
 0x1a5   : > { %v716_v13 = vpop.eup %715  ;;  %v432_v14 = vadd.f32 1e-05, %v428_v11 }
 0x1a6   : > { %v437_v15 = vsub.f32 1.5, %v436_v12  ;;  %v454_v16 = vmul.f32 %v716_v13, %v431_v3  ;;  %vm460_vm6 = vweird.f32 %v716_v13 }
 0x1a7   : > { %v718_v17 = vpop.eup %717  ;;  %719 = vrsqrt.f32 %v432_v14  ;;  %vm461_vm10 = vmor %vm459_vm7, %vm460_vm6  ;;  %vm469_vm14 = vweird.f32 %v432_v14 }
 0x1a8   : > { %v438_v18 = vmul.f32 %v714_v5, %v437_v15  ;;  %v455_v19 = vmul.f32 %v716_v13, %v454_v16  ;;  %v444_v20 = vmul.f32 %v718_v17, %v430_v6  ;;  %vm450_vm8 = vweird.f32 %v718_v17 }
 0x1a9   : > { %vm451_vm12 = vmor %vm449_vm11, %vm450_vm8 }
 0x1aa   : > { %v442_v22 = vsel %vm441_vm5, %v714_v5, %v438_v18  ;;  %v456_v23 = vmul.f32 0.5, %v455_v19  ;;  %v445_v24 = vmul.f32 %v718_v17, %v444_v20 }
 0x1ab   : > { %v473_v26 = vmul.f32 %v442_v22, %v401_v40 }
 0x1ac   : > { %v457_v27 = vsub.f32 1.5, %v456_v23  ;;  %v446_v28 = vmul.f32 0.5, %v445_v24 }
 0x1ad   : > { %v720_v29 = vpop.eup %719  ;;  %v479_v30 = vmul.f32 %v711_v21, %v473_v26 }
 0x1ae   : > { %v458_v31 = vmul.f32 %v716_v13, %v457_v27  ;;  %v447_v32 = vsub.f32 1.5, %v446_v28  ;;  %v464_v33 = vmul.f32 %v720_v29, %v432_v14  ;;  %vm470_vm13 = vweird.f32 %v720_v29 }
 0x1af   : > { %v485_v34 = vadd.f32 %v712_v25, %v479_v30  ;;  %vm471_vm15 = vmor %vm469_vm14, %vm470_vm13 }
 0x1b0   : > { %v462_v35 = vsel %vm461_vm10, %v716_v13, %v458_v31  ;;  %v448_v36 = vmul.f32 %v718_v17, %v447_v32  ;;  %v465_v37 = vmul.f32 %v720_v29, %v464_v33 }
 0x1b1   : > { %v489_v38 = vpack.c.bf16 %v485_v34, %v485_v34  ;;  %v475_v39 = vmul.f32 %v462_v35, %v909_v46 }
 0x1b2   : > { %v452_v40 = vsel %vm451_vm12, %v718_v17, %v448_v36  ;;  %v466_v41 = vmul.f32 0.5, %v465_v37 }
 0x1b3   : > { %494 = vst.msk [vmem:[%s248_s8] sm:$0xf] %vm493_vm9, %v489_v38  ;;  %v481_v42 = vmul.f32 %v711_v21, %v475_v39  ;;  %v474_v43 = vmul.f32 %v452_v40, %v911_v48 }
 0x1b4   : > { %v467_v44 = vsub.f32 1.5, %v466_v41 }
 0x1b5   : > { %v487_v45 = vadd.f32 %v712_v25, %v481_v42  ;;  %v480_v47 = vmul.f32 %v711_v21, %v474_v43 }
 0x1b6   : > { %v468_v49 = vmul.f32 %v720_v29, %v467_v44 }
 0x1b7   : > { %v491_v50 = vpack.c.bf16 %v487_v45, %v487_v45  ;;  %v486_v51 = vadd.f32 %v712_v25, %v480_v47 }
 0x1b8   : > { %v472_v46 = vsel %vm471_vm15, %v720_v29, %v468_v49 }
 0x1b9   : > { %496 = vst.msk [vmem:[%s248_s8 + $0x8] sm:$0xf] %vm493_vm9, %v491_v50  ;;  %v490_v52 = vpack.c.bf16 %v486_v51, %v486_v51  ;;  %v476_v48 = vmul.f32 %v472_v46, %v919_v55 }
 0x1bb   : > { %495 = vst.msk [vmem:[%s248_s8 + $0x4] sm:$0xf] %vm493_vm9, %v490_v52  ;;  %v482_v53 = vmul.f32 %v711_v21, %v476_v48 }
 0x1bd   : > { %v488_v54 = vadd.f32 %v712_v25, %v482_v53 }
 0x1bf   : > { %v492_v56 = vpack.c.bf16 %v488_v54, %v488_v54 }
 0x1c1   : > { %497 = vst.msk [vmem:[%s248_s8 + $0xc] sm:$0xf] %vm493_vm9, %v492_v56 }
 0x1c2   : > { %748 = shalt.err (!%p745_p5)
}
 0x1c3   : > { %s801_s30 = smov 64   ;;  %s802_s7 = smov 4  }
 0x1c4   : > { %653 = dma.vmem_to_hbm [thread:$0]  (%p868_p4), %s514_s18, 256, %s516_s13, %s499_s14, %s801_s30, %s801_s30, %s802_s7  }
 0x1c5 PF: > { %p659_p6 = scmp.ge.s32.totalorder %s799_s20, 2  ;;  %s530_s8 = sand.u32 1, %s779_s15  }
 0x1c6   : > { %s531_s9 = scalar_lea.sflag [#allocation3], %s530_s8 }
 0x1c7   : > { %p656_p7 = pnand %p659_p6, %p875_p8 }
 0x1c9   : > { %p657_p9 = pneg %p656_p7 }
 0x1cb   : > { %774 = dma.done.wait (%p657_p9), %s531_s9, 256  }
 0x1cc   : > { %776 = vsyncadd (%p657_p9), %s531_s9, 4294967040  ;;  %s17_s20 = sadd.s32 1, %s799_s20   ;;  %s985_s15 = smov %s783_s16 }
 0x1cd   : > { %p14_p10 = scmp.ge.s32.totalorder %s17_s20, 4   ;;  %s986_s16 = smov %s787_s17 }
 0x1ce   : > { %s987_s17 = smov %s881_s28  ;;  %s988_s18 = smov %s795_s19 }
 0x1cf   : > { %s989_s19 = smov %s991_s23  ;;  %16 = sbr.rel (!%p14_p10) target bundleno = 4 (0x4), region = 75 }
 0x1d4   :  { %537 = vsyncpa [#allocation3], 1 }
 0x1d5   :  { %539 = vsyncpa [#allocation3 + $0x1], 1 }

</bundles_post_ra>
